<compile_context>
chip_gen: v7x
topology: tpu7x:2x2x1
jax: 0.10.0
libtpu: 0.0.40
codegen_flags: <defaults>
</compile_context>

<pallas_src>
import jax
import jax.numpy as jnp
from jax.experimental import pallas as pl
from jax.experimental.pallas import tpu as pltpu


def _encoder1_init_kernel(x0_ref, w_ref, b_ref, out_ref):
    """out = x0 @ [Wx | 0] + [b | 0]  -> lanes [0:H) = hn = z0, lanes [H:2H) = cn = 0.

    x0_ref  : (tm, F)   float32  -- x at seq index 0 (time channel t_0 == 0 dropped)
    w_ref   : (F, 2H)   float32  -- [W[:, 1:].T | zeros]
    b_ref   : (1, 2H)   float32  -- [b | zeros]
    out_ref : (tm, 2H)  float32  -- [hn | cn], single unmasked 128-lane store
    """
    out_ref[...] = (
        jnp.dot(x0_ref[...], w_ref[...], preferred_element_type=jnp.float32)
        + b_ref[...]
    )


def encoder1_forward(x, w, b, hidden_dim=64):
    """JAX/Pallas equivalent of Encoder1.forward.

    x : (seq_len, batch, nodes, feature_dim) float32
    w : (hidden_dim, feature_dim + 1) float32   -- nn.Linear weight
    b : (hidden_dim,) float32                   -- nn.Linear bias
    returns (hn, cn) with hn.shape == cn.shape == (1, batch*nodes, hidden_dim)
    """
    seq_len, batch_size, number_nodes, feature_dim = x.shape
    bn = batch_size * number_nodes

    # TODO(synk): torchcde hermite coefficients / CubicSpline / cdeint and the GATv2
    # vector field F (needs the on-disk PEMSD4 edge list) have no Pallas equivalent;
    # with tt=[3.0] (== spline start) cdeint returns z0 unchanged, so they are
    # unreachable and skipping them is semantically exact.

    # (seq, batch, nodes, F) -> (seq, BN, F): contiguous, free reshape.  Only seq
    # index 0 is consumed; the BlockSpec below selects it directly.
    x_r = x.reshape(seq_len, bn, feature_dim)

    # Zero-pad weight/bias to 2H output lanes so hn and cn come out of the kernel
    # as one lane-dense (BN, 2H) slab.
    w_x = w[:, 1:].T.astype(jnp.float32)                          # (F, H)
    w_pad = jnp.concatenate([w_x, jnp.zeros_like(w_x)], axis=1)    # (F, 2H)
    b_pad = jnp.concatenate(
        [b.astype(jnp.float32), jnp.zeros_like(b)], axis=0
    ).reshape(1, 2 * hidden_dim)                                   # (1, 2H)

    # Row tiling: keep grid=(1,) while everything fits comfortably; only tile BN
    # (and shard across TensorCores) at production sizes.
    tm = bn if bn <= 2048 else 512
    grid = (pl.cdiv(bn, tm),)

    out = pl.pallas_call(
        _encoder1_init_kernel,
        grid=grid,
        out_shape=jax.ShapeDtypeStruct((bn, 2 * hidden_dim), jnp.float32),
        in_specs=[
            # select seq index 0; kernel sees (tm, F)
            pl.BlockSpec((pl.Squeezed(), tm, feature_dim), lambda i: (0, i, 0)),
            # weight / bias loaded once, VMEM-resident across row tiles
            pl.BlockSpec((feature_dim, 2 * hidden_dim), lambda i: (0, 0)),
            pl.BlockSpec((1, 2 * hidden_dim), lambda i: (0, 0)),
        ],
        out_specs=pl.BlockSpec((tm, 2 * hidden_dim), lambda i: (i, 0)),
        compiler_params=pltpu.CompilerParams(
            dimension_semantics=("parallel",)
        ),
    )(x_r, w_pad, b_pad)

    hn = out[None, :, :hidden_dim]     # (1, BN, H)  == y.permute(1, 0, 2)
    cn = out[None, :, hidden_dim:]     # (1, BN, H)  == torch.zeros(hn.shape)
    return hn, cn


if __name__ == "__main__":
    key = jax.random.PRNGKey(0)
    k_x, k_w, k_b = jax.random.split(key, 3)

    # small shapes consistent with the module: seq=8 (only first step matters),
    # batch=2, nodes=16, feature_dim=4 (Linear expects feature_dim+1 = 5), hidden=64.
    seq, batch, nodes, feat, hidden = 8, 2, 16, 4, 64
    x = jax.random.normal(k_x, (seq, batch, nodes, feat), dtype=jnp.float32)
    w = jax.random.normal(k_w, (hidden, feat + 1), dtype=jnp.float32) * 0.1
    b = jax.random.normal(k_b, (hidden,), dtype=jnp.float32) * 0.1

    fwd = jax.jit(encoder1_forward, static_argnames=("hidden_dim",))
    hn, cn = fwd(x, w, b, hidden_dim=hidden)
    jax.block_until_ready((hn, cn))

    # correctness check against a plain-JAX reference of the same math
    bn = batch * nodes
    x0 = jnp.transpose(x[:4].reshape(4, bn, feat), (1, 0, 2))[:, 0, :]
    inputs0_ref = jnp.concatenate([jnp.zeros((bn, 1), jnp.float32), x0], axis=1)
    ref = inputs0_ref @ w.T + b
    assert hn.shape == (1, bn, hidden) and cn.shape == (1, bn, hidden)
    assert jnp.allclose(hn[0], ref, atol=1e-5), "mismatch vs reference"
    assert not jnp.any(cn), "cn must be all zeros"

    print("KERNEL_OK")
</pallas_src>

<mosaic_0001>
module attributes {stable_mosaic.version = 11 : i64} {
  func.func @_encoder1_init_kernel(%arg0: i32, %arg1: memref<1x32x4xf32, #tpu.memory_space<vmem>>, %arg2: memref<4x128xf32, #tpu.memory_space<vmem>>, %arg3: memref<1x128xf32, #tpu.memory_space<vmem>>, %arg4: memref<32x128xf32, #tpu.memory_space<vmem>>) attributes {dimension_semantics = [#tpu.dimension_semantics<parallel>], iteration_bounds = array<i64: 1>, scalar_prefetch = 0 : i64, scratch_operands = 0 : i64, tpu.core_type = #tpu.core_type<tc>, window_params = [{transform_indices = @transform_0, window_bounds = array<i64: 1, 32, 4>}, {pipeline_mode = #tpu.pipeline_mode<synchronous>, transform_indices = @transform_1, window_bounds = array<i64: 4, 128>}, {pipeline_mode = #tpu.pipeline_mode<synchronous>, transform_indices = @transform_2, window_bounds = array<i64: 1, 128>}, {transform_indices = @transform_3, window_bounds = array<i64: 32, 128>}]} {
    %c0 = arith.constant 0 : index
    %c0_0 = arith.constant 0 : index
    %c0_1 = arith.constant 0 : index
    %0 = vector.load %arg1[%c0, %c0_0, %c0_1] : memref<1x32x4xf32, #tpu.memory_space<vmem>>, vector<1x32x4xf32>
    %1 = vector.shape_cast %0 : vector<1x32x4xf32> to vector<32x4xf32>
    %c0_2 = arith.constant 0 : index
    %c0_3 = arith.constant 0 : index
    %2 = vector.load %arg2[%c0_2, %c0_3] : memref<4x128xf32, #tpu.memory_space<vmem>>, vector<4x128xf32>
    %cst = arith.constant dense<0.000000e+00> : vector<32x128xf32>
    %3 = tpu.matmul %1, %2, %cst {dimension_numbers = #tpu.dot_dimension_numbers<[1], [0], [0], [1], [0, 0, 1, 1], [], []>} : vector<32x4xf32>, vector<4x128xf32>, vector<32x128xf32> -> vector<32x128xf32>
    %c0_4 = arith.constant 0 : index
    %c0_5 = arith.constant 0 : index
    %4 = vector.load %arg3[%c0_4, %c0_5] : memref<1x128xf32, #tpu.memory_space<vmem>>, vector<1x128xf32>
    %5 = vector.broadcast %4 : vector<1x128xf32> to vector<32x128xf32>
    %6 = arith.addf %3, %5 : vector<32x128xf32>
    %c0_6 = arith.constant 0 : index
    %c0_7 = arith.constant 0 : index
    %7 = vector.load %arg4[%c0_6, %c0_7] : memref<32x128xf32, #tpu.memory_space<vmem>>, vector<32x128xf32>
    tpu.vector_store %arg4[%c0_6, %c0_7], %6 {strides = array<i32>} : memref<32x128xf32, #tpu.memory_space<vmem>>, vector<32x128xf32>,
    return
  }
  func.func @transform_0(%arg0: i32) -> (i32, i32, i32) {
    %c0_i32 = arith.constant 0 : i32
    %c0_i32_0 = arith.constant 0 : i32
    %c0_i32_1 = arith.constant 0 : i32
    return %c0_i32, %arg0, %c0_i32_0 : i32, i32, i32
  }
  func.func @transform_1(%arg0: i32) -> (i32, i32) {
    %c0_i32 = arith.constant 0 : i32
    %c0_i32_0 = arith.constant 0 : i32
    %c0_i32_1 = arith.constant 0 : i32
    return %c0_i32, %c0_i32_0 : i32, i32
  }
  func.func @transform_2(%arg0: i32) -> (i32, i32) {
    %c0_i32 = arith.constant 0 : i32
    %c0_i32_0 = arith.constant 0 : i32
    %c0_i32_1 = arith.constant 0 : i32
    return %c0_i32, %c0_i32_0 : i32, i32
  }
  func.func @transform_3(%arg0: i32) -> (i32, i32) {
    %c0_i32 = arith.constant 0 : i32
    %c0_i32_0 = arith.constant 0 : i32
    return %arg0, %c0_i32 : i32, i32
  }
}

</mosaic_0001>

<bundles_post_ra>
// kernel: encoder1_forward.1
= control target key start
LH: loop header
LB: loop body
LE: loop exit
PB: predicated region body
PF: predicated region fallthrough
CT: control target
= control target key end

     0   :  { %vm39_vm0 = vcmask 1043456   ;;  %vm26_vm1 = vcmask 31744   ;;  %s207_s1 = inlined_call_operand.vmem [shape: f32[4,128], index: 1, kind: input, shape index: {}]   ;;  %s208_s0 = inlined_call_operand.vmem [shape: f32[8,32,4], index: 0, kind: input, shape index: {}]   ;;  %s209_s2 = inlined_call_operand.vmem [shape: f32[1,128], index: 2, kind: input, shape index: {}]   ;;  %s210_s3 = inlined_call_operand.vmem [shape: f32[32,128], index: 3, kind: output, shape index: {}]  }
   0x1   :  { %v18_v0 = vld [vmem:[%s207_s1] sm:$0xf]  ;;  %v16_v2 = vld [vmem:[%s208_s0 + $0x10] sm:$0xff]  ;;  %v15_v3 = vld [vmem:[%s208_s0 + $0x8] sm:$0xff] }
   0x2   :  { %v14_v1 = vld [vmem:[%s208_s0] sm:$0xff]  ;;  %147 = vmatprep.subr.msk.mxu0 %vm39_vm0, %v18_v0  ;;  %155 = vmatprep.subr.msk.mxu1 %vm39_vm0, %v18_v0  ;;  %v17_v4 = vld [vmem:[%s208_s0 + $0x18] sm:$0xff] }
   0x3   :  { %148 = vmatpush3.msk.msra.mxu0 %vm39_vm0, %v18_v0  ;;  %156 = vmatpush3.msk.msra.mxu1 %vm39_vm0, %v18_v0  ;;  %v136_v5 = vld [vmem:[%s209_s2] ss:$0 sm:$0xff] }
   0x4   :  { %149 = vmatprep.mubr.msk.f32.mxu0 %vm26_vm1, %v14_v1  ;;  %152 = vmatprep.mubr.msk.f32.mxu1 %vm26_vm1, %v16_v2 }
   0x5   :  { %150 = vmatmul.mubr.msk.f32.vlgmr.msra.gmra.mrb[0].mxu0 %vm26_vm1, %v15_v3  ;;  %153 = vmatmul.mubr.msk.f32.vlgmr.msra.gmra.mrb[0].mxu1 %vm26_vm1, %v17_v4 }
  0xd8   :  { %v151_v6 = vpop.f32.mrb[0].mxu0  ;;  %v154_v7 = vpop.f32.mrb[0].mxu1 }
  0xd9   :  { %v115_v8 = vadd.f32 %v151_v6, %v136_v5  ;;  %v125_v9 = vadd.f32 %v154_v7, %v136_v5  ;;  %v109_v10 = vpop.f32.mrb[1].mxu0  ;;  %v119_v11 = vpop.f32.mrb[1].mxu1 }
  0xda   :  { %v110_v12 = vadd.f32 %v136_v5, %v109_v10  ;;  %v120_v13 = vadd.f32 %v136_v5, %v119_v11 }
  0xdb   :  { %129 = vst [vmem:[%s210_s3 + $0x8] sm:$0xff] %v115_v8  ;;  %131 = vst [vmem:[%s210_s3 + $0x18] sm:$0xff] %v125_v9 }
  0xdc   :  { %128 = vst [vmem:[%s210_s3] sm:$0xff] %v110_v12  ;;  %130 = vst [vmem:[%s210_s3 + $0x10] sm:$0xff] %v120_v13 }

</bundles_post_ra>
